<compile_context>
chip_gen: v6e
topology: v6e:2x2x1
jax: 0.10.0
libtpu: 0.0.40
codegen_flags: <defaults>
</compile_context>

<pallas_src>
import functools

import jax
import jax.numpy as jnp
from jax.experimental import pallas as pl
from jax.experimental.pallas import tpu as pltpu

_BLOCK_BUDGET_BYTES = 4 << 20   # per x-block budget (in + out, double-buffered ~ 16 MiB)
_VMEM_LIMIT_BYTES = 32 << 20    # scoped VMEM limit: safe on v5e/v6e/v7x


def _round_up(v, m):
    return ((v + m - 1) // m) * m


# --------------------------------------------------------------------------
# WSLinear heads in plain XLA (tiny matmul; a dedicated Pallas call is pure overhead)
# --------------------------------------------------------------------------
def style_linears(w, weight_scale, bias_scale, weight_bias, bias_bias):
    """Returns (style_scale, style_bias), each (N, C) float32."""
    D = w.shape[-1]
    wf = w.astype(jnp.float32) * ((2.0 / D) ** 0.5)
    ss = wf @ weight_scale.astype(jnp.float32).T + bias_scale.astype(jnp.float32)
    sb = wf @ weight_bias.astype(jnp.float32).T + bias_bias.astype(jnp.float32)
    return ss, sb


# --------------------------------------------------------------------------
# Kernel A (small HW): fused single-pass instance-norm + modulate
# --------------------------------------------------------------------------
def _adain_fused_kernel(x_ref, s_ref, b_ref, o_ref, *, eps):
    x = x_ref[...].astype(jnp.float32)                            # (1, tc, HW)
    mean = jnp.mean(x, axis=-1, keepdims=True)
    centered = x - mean
    var = jnp.mean(centered * centered, axis=-1, keepdims=True)   # biased variance
    inv = jax.lax.rsqrt(var + eps)                                # EUP rsqrt
    a = s_ref[...] * inv                                          # fold style scale
    o_ref[...] = (centered * a + b_ref[...]).astype(o_ref.dtype)


# --------------------------------------------------------------------------
# Kernel B1 (large HW): single-traversal stats over HW tiles -> fused coeffs (a, b')
# --------------------------------------------------------------------------
def _stats_kernel(x_ref, s_ref, b_ref, a_ref, bp_ref, sum_sc, sq_sc,
                  *, eps, hw_total, thw):
    hw_i = pl.program_id(2)

    @pl.when(hw_i == 0)
    def _():
        sum_sc[...] = jnp.zeros_like(sum_sc)
        sq_sc[...] = jnp.zeros_like(sq_sc)

    x = x_ref[...].astype(jnp.float32)                            # (1, tc, thw)
    if hw_total % thw:  # mask the ragged HW tail (trace-time condition)
        lane = jax.lax.broadcasted_iota(jnp.int32, x.shape, 2) + hw_i * thw
        x = jnp.where(lane < hw_total, x, 0.0)
    sum_sc[...] += jnp.sum(x, axis=-1, keepdims=True)
    sq_sc[...] += jnp.sum(x * x, axis=-1, keepdims=True)

    @pl.when(hw_i == pl.num_programs(2) - 1)
    def _():
        inv_n = 1.0 / hw_total
        mean = sum_sc[...] * inv_n
        var = jnp.maximum(sq_sc[...] * inv_n - mean * mean, 0.0)
        inv = jax.lax.rsqrt(var + eps)
        a = s_ref[...] * inv
        a_ref[...] = a
        bp_ref[...] = b_ref[...] - a * mean


# --------------------------------------------------------------------------
# Kernel B2 (large HW): apply out = x * a + b' per HW tile (one FMA/element)
# --------------------------------------------------------------------------
def _modulate_kernel(x_ref, a_ref, b_ref, o_ref):
    o_ref[...] = (x_ref[...].astype(jnp.float32) * a_ref[...]
                  + b_ref[...]).astype(o_ref.dtype)


# --------------------------------------------------------------------------
# Tiling plan
# --------------------------------------------------------------------------
def _plan_tiles(N, C, HW, itemsize, budget):
    """Returns (mode, tc, thw): mode in {"fused", "tiled"}."""
    base_tc = C if C < 8 else 8
    if base_tc * HW * itemsize <= budget:
        if C <= 8:
            tc = C
        else:
            tc = int(max(8, min((budget // (HW * itemsize)) // 8 * 8, _round_up(C, 8))))
            if N == 1 and tc >= C:
                # make sure the parallel grid has >=2 steps (v7x has 2 TensorCores)
                tc = max(8, _round_up(-(-C // 2), 8))
        return "fused", tc, HW
    # HW too large for one block: tile HW, keep the minimal legal channel tile.
    tc = base_tc
    thw = int(max(128, min((budget // (tc * itemsize)) // 128 * 128,
                           _round_up(HW, 128))))
    return "tiled", tc, thw


# --------------------------------------------------------------------------
# Instance-norm + style modulation wrapper
# --------------------------------------------------------------------------
def adain_modulate(x, style_scale, style_bias, eps=1e-5,
                   block_budget_bytes=_BLOCK_BUDGET_BYTES,
                   vmem_limit_bytes=_VMEM_LIMIT_BYTES):
    """x: (N, C, H, W); style_scale/style_bias: (N, C) -> (N, C, H, W)."""
    N, C, H, W = x.shape
    HW = H * W
    x2 = x.reshape(N, C, HW)
    s3 = style_scale.reshape(N, C, 1).astype(jnp.float32)
    b3 = style_bias.reshape(N, C, 1).astype(jnp.float32)
    itemsize = jnp.dtype(x.dtype).itemsize

    mode, tc, thw = _plan_tiles(N, C, HW, itemsize, block_budget_bytes)
    c_steps = pl.cdiv(C, tc)

    if mode == "fused":
        out = pl.pallas_call(
            functools.partial(_adain_fused_kernel, eps=eps),
            out_shape=jax.ShapeDtypeStruct((N, C, HW), x.dtype),
            grid_spec=pltpu.PrefetchScalarGridSpec(
                num_scalar_prefetch=0,
                grid=(N, c_steps),
                in_specs=[
                    pl.BlockSpec((1, tc, HW), lambda n, c: (n, c, 0)),
                    pl.BlockSpec((1, tc, 1), lambda n, c: (n, c, 0)),
                    pl.BlockSpec((1, tc, 1), lambda n, c: (n, c, 0)),
                ],
                out_specs=pl.BlockSpec((1, tc, HW), lambda n, c: (n, c, 0)),
            ),
            compiler_params=pltpu.CompilerParams(
                dimension_semantics=("parallel", "parallel"),
                vmem_limit_bytes=vmem_limit_bytes,
            ),
        )(x2, s3, b3)
        return out.reshape(N, C, H, W)

    # ---- two-pass path for large HW ----
    hw_steps = pl.cdiv(HW, thw)

    a, bp = pl.pallas_call(
        functools.partial(_stats_kernel, eps=eps, hw_total=HW, thw=thw),
        out_shape=(jax.ShapeDtypeStruct((N, C, 1), jnp.float32),
                   jax.ShapeDtypeStruct((N, C, 1), jnp.float32)),
        grid_spec=pltpu.PrefetchScalarGridSpec(
            num_scalar_prefetch=0,
            grid=(N, c_steps, hw_steps),
            in_specs=[
                pl.BlockSpec((1, tc, thw), lambda n, c, h: (n, c, h)),
                pl.BlockSpec((1, tc, 1), lambda n, c, h: (n, c, 0)),
                pl.BlockSpec((1, tc, 1), lambda n, c, h: (n, c, 0)),
            ],
            out_specs=[
                pl.BlockSpec((1, tc, 1), lambda n, c, h: (n, c, 0)),
                pl.BlockSpec((1, tc, 1), lambda n, c, h: (n, c, 0)),
            ],
            scratch_shapes=[pltpu.VMEM((1, tc, 1), jnp.float32),
                            pltpu.VMEM((1, tc, 1), jnp.float32)],
        ),
        compiler_params=pltpu.CompilerParams(
            dimension_semantics=("parallel", "parallel", "arbitrary"),
            vmem_limit_bytes=vmem_limit_bytes,
        ),
    )(x2, s3, b3)

    out = pl.pallas_call(
        _modulate_kernel,
        out_shape=jax.ShapeDtypeStruct((N, C, HW), x.dtype),
        grid_spec=pltpu.PrefetchScalarGridSpec(
            num_scalar_prefetch=0,
            grid=(N, c_steps, hw_steps),
            in_specs=[
                pl.BlockSpec((1, tc, thw), lambda n, c, h: (n, c, h)),
                pl.BlockSpec((1, tc, 1), lambda n, c, h: (n, c, 0)),
                pl.BlockSpec((1, tc, 1), lambda n, c, h: (n, c, 0)),
            ],
            out_specs=pl.BlockSpec((1, tc, thw), lambda n, c, h: (n, c, h)),
        ),
        compiler_params=pltpu.CompilerParams(
            dimension_semantics=("parallel", "parallel", "parallel"),
            vmem_limit_bytes=vmem_limit_bytes,
        ),
    )(x2, a, bp)

    return out.reshape(N, C, H, W)


# --------------------------------------------------------------------------
# Full AdaIN forward
# --------------------------------------------------------------------------
def adain_forward(x, w, weight_scale, bias_scale, weight_bias, bias_bias,
                  eps=1e-5, block_budget_bytes=_BLOCK_BUDGET_BYTES,
                  vmem_limit_bytes=_VMEM_LIMIT_BYTES):
    ss, sb = style_linears(w, weight_scale, bias_scale, weight_bias, bias_bias)
    return adain_modulate(x, ss, sb, eps=eps,
                          block_budget_bytes=block_budget_bytes,
                          vmem_limit_bytes=vmem_limit_bytes)


if __name__ == "__main__":
    key = jax.random.PRNGKey(0)
    k1, k2, k3, k4 = jax.random.split(key, 4)

    def reference(x, w, Ws, bs, Wb, bb, eps=1e-5):
        D = w.shape[-1]
        s = (2.0 / D) ** 0.5
        ss = (w * s) @ Ws.T + bs
        sb = (w * s) @ Wb.T + bb
        mean = x.mean(axis=(2, 3), keepdims=True)
        var = ((x - mean) ** 2).mean(axis=(2, 3), keepdims=True)
        xn = (x - mean) / jnp.sqrt(var + eps)
        return ss[:, :, None, None] * xn + sb[:, :, None, None]

    W_DIM = 32

    # Case 1: small shapes -> fused single-pass path.
    N, C, H, W_SP = 2, 4, 16, 16
    x = jax.random.normal(k1, (N, C, H, W_SP), dtype=jnp.float32)
    w = jax.random.normal(k2, (N, W_DIM), dtype=jnp.float32)
    Ws = jax.random.normal(k3, (C, W_DIM), dtype=jnp.float32)
    Wb = jax.random.normal(k4, (C, W_DIM), dtype=jnp.float32)
    bs = jnp.zeros((C,), jnp.float32)
    bb = jnp.zeros((C,), jnp.float32)

    y = adain_forward(x, w, Ws, bs, Wb, bb)
    jax.block_until_ready(y)
    ref = reference(x, w, Ws, bs, Wb, bb)
    assert y.shape == x.shape
    assert jnp.allclose(y, ref, atol=1e-4, rtol=1e-4)

    # Case 2: tiny block budget forces the HW-tiled two-pass path
    # (also exercises ragged C = 12 and a ragged HW tail).
    N2, C2, H2, W2 = 2, 12, 18, 20
    x2 = jax.random.normal(k1, (N2, C2, H2, W2), dtype=jnp.float32)
    w2 = jax.random.normal(k2, (N2, W_DIM), dtype=jnp.float32)
    Ws2 = jax.random.normal(k3, (C2, W_DIM), dtype=jnp.float32)
    Wb2 = jax.random.normal(k4, (C2, W_DIM), dtype=jnp.float32)
    bs2 = jnp.zeros((C2,), jnp.float32)
    bb2 = jnp.zeros((C2,), jnp.float32)

    y2 = adain_forward(x2, w2, Ws2, bs2, Wb2, bb2, block_budget_bytes=4096)
    jax.block_until_ready(y2)
    ref2 = reference(x2, w2, Ws2, bs2, Wb2, bb2)
    assert y2.shape == x2.shape
    assert jnp.allclose(y2, ref2, atol=1e-4, rtol=1e-4)

    print("KERNEL_OK")
</pallas_src>

<mosaic_0001>
module attributes {stable_mosaic.version = 11 : i64} {
  func.func @_adain_fused_kernel(%arg0: i32, %arg1: i32, %arg2: memref<1x4x256xf32, #tpu.memory_space<vmem>>, %arg3: memref<1x4x1xf32, #tpu.memory_space<vmem>>, %arg4: memref<1x4x1xf32, #tpu.memory_space<vmem>>, %arg5: memref<1x4x256xf32, #tpu.memory_space<vmem>>) attributes {dimension_semantics = [#tpu.dimension_semantics<parallel>, #tpu.dimension_semantics<parallel>], iteration_bounds = array<i64: 2, 1>, scalar_prefetch = 0 : i64, scratch_operands = 0 : i64, tpu.core_type = #tpu.core_type<tc>, window_params = [{transform_indices = @transform_0, window_bounds = array<i64: 1, 4, 256>}, {transform_indices = @transform_1, window_bounds = array<i64: 1, 4, 1>}, {transform_indices = @transform_2, window_bounds = array<i64: 1, 4, 1>}, {transform_indices = @transform_3, window_bounds = array<i64: 1, 4, 256>}]} {
    %c0 = arith.constant 0 : index
    %c0_0 = arith.constant 0 : index
    %c0_1 = arith.constant 0 : index
    %0 = vector.load %arg2[%c0, %c0_0, %c0_1] : memref<1x4x256xf32, #tpu.memory_space<vmem>>, vector<1x4x256xf32>
    %cst = arith.constant dense<0.000000e+00> : vector<1x4xf32>
    %1 = vector.multi_reduction <add>, %0, %cst [2] : vector<1x4x256xf32> to vector<1x4xf32>
    %2 = vector.shape_cast %1 : vector<1x4xf32> to vector<1x4x1xf32>
    %cst_2 = arith.constant 2.560000e+02 : f32
    %3 = vector.broadcast %cst_2 : f32 to vector<1x4x1xf32>
    %4 = arith.divf %2, %3 : vector<1x4x1xf32>
    %5 = vector.broadcast %4 : vector<1x4x1xf32> to vector<1x4x256xf32>
    %6 = arith.subf %0, %5 : vector<1x4x256xf32>
    %7 = arith.mulf %6, %6 : vector<1x4x256xf32>
    %cst_3 = arith.constant dense<0.000000e+00> : vector<1x4xf32>
    %8 = vector.multi_reduction <add>, %7, %cst_3 [2] : vector<1x4x256xf32> to vector<1x4xf32>
    %9 = vector.shape_cast %8 : vector<1x4xf32> to vector<1x4x1xf32>
    %cst_4 = arith.constant 2.560000e+02 : f32
    %10 = vector.broadcast %cst_4 : f32 to vector<1x4x1xf32>
    %11 = arith.divf %9, %10 : vector<1x4x1xf32>
    %cst_5 = arith.constant 9.99999974E-6 : f32
    %12 = vector.broadcast %cst_5 : f32 to vector<1x4x1xf32>
    %13 = arith.addf %11, %12 : vector<1x4x1xf32>
    %14 = math.rsqrt %13 : vector<1x4x1xf32>
    %c0_6 = arith.constant 0 : index
    %c0_7 = arith.constant 0 : index
    %c0_8 = arith.constant 0 : index
    %15 = vector.load %arg3[%c0_6, %c0_7, %c0_8] : memref<1x4x1xf32, #tpu.memory_space<vmem>>, vector<1x4x1xf32>
    %16 = arith.mulf %15, %14 : vector<1x4x1xf32>
    %17 = vector.broadcast %16 : vector<1x4x1xf32> to vector<1x4x256xf32>
    %18 = arith.mulf %6, %17 : vector<1x4x256xf32>
    %c0_9 = arith.constant 0 : index
    %c0_10 = arith.constant 0 : index
    %c0_11 = arith.constant 0 : index
    %19 = vector.load %arg4[%c0_9, %c0_10, %c0_11] : memref<1x4x1xf32, #tpu.memory_space<vmem>>, vector<1x4x1xf32>
    %20 = vector.broadcast %19 : vector<1x4x1xf32> to vector<1x4x256xf32>
    %21 = arith.addf %18, %20 : vector<1x4x256xf32>
    %c0_12 = arith.constant 0 : index
    %c0_13 = arith.constant 0 : index
    %c0_14 = arith.constant 0 : index
    %22 = vector.load %arg5[%c0_12, %c0_13, %c0_14] : memref<1x4x256xf32, #tpu.memory_space<vmem>>, vector<1x4x256xf32>
    tpu.vector_store %arg5[%c0_12, %c0_13, %c0_14], %21 {strides = array<i32>} : memref<1x4x256xf32, #tpu.memory_space<vmem>>, vector<1x4x256xf32>,
    return
  }
  func.func @transform_0(%arg0: i32, %arg1: i32) -> (i32, i32, i32) {
    %c0_i32 = arith.constant 0 : i32
    %c0_i32_0 = arith.constant 0 : i32
    return %arg0, %arg1, %c0_i32 : i32, i32, i32
  }
  func.func @transform_1(%arg0: i32, %arg1: i32) -> (i32, i32, i32) {
    %c0_i32 = arith.constant 0 : i32
    %c0_i32_0 = arith.constant 0 : i32
    return %arg0, %arg1, %c0_i32 : i32, i32, i32
  }
  func.func @transform_2(%arg0: i32, %arg1: i32) -> (i32, i32, i32) {
    %c0_i32 = arith.constant 0 : i32
    %c0_i32_0 = arith.constant 0 : i32
    return %arg0, %arg1, %c0_i32 : i32, i32, i32
  }
  func.func @transform_3(%arg0: i32, %arg1: i32) -> (i32, i32, i32) {
    %c0_i32 = arith.constant 0 : i32
    %c0_i32_0 = arith.constant 0 : i32
    return %arg0, %arg1, %c0_i32 : i32, i32, i32
  }
}

</mosaic_0001>

<bundles_post_ra>
// kernel: tpu_custom_call.1
= control target key start
LH: loop header
LB: loop body
LE: loop exit
PB: predicated region body
PF: predicated region fallthrough
CT: control target
= control target key end

     0   :  { %8 = vsyncpa [#allocation3], 0  ;;  %s736_s0 = inlined_call_operand.vmem [shape: f32[2,4,256], index: 0, kind: input, shape index: {}]   ;;  %s737_s1 = inlined_call_operand.vmem [shape: f32[2,4,1], index: 1, kind: input, shape index: {}]   ;;  %s738_s2 = inlined_call_operand.vmem [shape: f32[2,4,1], index: 2, kind: input, shape index: {}]   ;;  %s739_s3 = inlined_call_operand.hbm [shape: f32[2,4,256], index: 3, kind: output, shape index: {}]  }
   0x1   :  { %10 = vsyncpa [#allocation3 + $0x1], 0  ;;  %s623_s12 = smov 0   ;;  %s625_s13 = smov 0  }
   0x2   :  { %s627_s14 = smov 0   ;;  %s629_s15 = smov 0  }
   0x3   :  { %s631_s16 = smov 0   ;;  %s633_s17 = smov 0  }
   0x4 LB: > { %s443_s18 = sadd.s32 4294967295, %s598_s17   ;;  %s444_s19 = sadd.s32 4294967294, %s598_s17   ;;  %s598_s17 = sphi %s633_s17, %s16_s17   ;;  %s594_s16 = sphi %s631_s16, %s746_s16   ;;  %s590_s15 = sphi %s629_s15, %s745_s15   ;;  %s586_s14 = sphi %s627_s14, %s744_s14   ;;  %s582_s13 = sphi %s625_s13, %s743_s13   ;;  %s578_s12 = sphi %s623_s12, %s742_s12  }
   0x5   : > { %s28_s20 = sadd.s32 1, %s594_s16  ;;  %s121_s21 = sadd.s32 1, %s586_s14 }
   0x6   : > { %p30_p0 = scmp.ge.s32.totalorder %s28_s20, 2  ;;  %p131_p1 = scmp.ne.s32.totalorder %s586_s14, %s582_s13 }
   0x7   : > { %p132_p2 = scmp.eq.s32.totalorder %s443_s18, 1  ;;  %p137_p3 = scmp.ne.s32.totalorder %s582_s13, %s578_s12 }
   0x8   : > { %s748_s20 = smov (%p30_p0, %s28_s20), 0  ;;  %p138_p5 = scmp.eq.s32.totalorder %s444_s19, 1 }
   0x9   : > { %p663_p4 = por %p132_p2, %p131_p1  ;;  %s116_s23 = ssub.s32 %s594_s16, %s748_s20 }
   0xa   : > { %p447_p6 = scmp.ge.s32.totalorder %s598_s17, 1  ;;  %p119_p7 = scmp.eq.s32.totalorder %s116_s23, 0 }
   0xb   : > { %p670_p8 = por %p138_p5, %p137_p3  ;;  %p188_p9 = scmp.lt.s32.totalorder %s598_s17, 3 }
   0xc   : > { %s676_s25 = scalar_select %p119_p7, %s586_s14, %s121_s21  }
   0xd   : > { %p189_p10 = pnand %p447_p6, %p188_p9 }
   0xe   : > { %p230_p11 = scmp.lt.s32.totalorder (!%p189_p10), %s590_s15, 1  ;;  %s227_s11 = sand.u32 (!%p189_p10), 1, %s582_s13  }
   0xf   : > { %192 = sbr.rel (%p189_p10) target bundleno = 484 (0x1e4), region = 32  ;;  %s448_s18 = sshll.u32 (!%p189_p10), %s227_s11, 3 }
  0x10   : > { %s459_s19 = sshll.u32 (!%p189_p10), %s590_s15, 7  ;;  %s229_s21 = scalar_lea.vmem (!%p189_p10), [#allocation2], %s448_s18 }
  0x11   : > { %s334_s23 = sshll.u32 (!%p189_p10), %s229_s21, 4  ;;  %s332_s28 = scalar_lea.hbm (!%p189_p10), %s739_s3, %s459_s19  ;;  %s335_s23 = int_to_ptr.vmem [resolvable:$true] %s334_s23 }
  0x12   : > { %s318_s29 = scalar_lea.sflag (!%p189_p10), [#allocation3], %s227_s11 }
  0x14   : > { %s680_s26 = scalar_select %p230_p11, %s590_s15, 1  ;;  %vm257_vm0 = vcmask 1043456   ;;  %v600_v5 = vmov 839922192   ;;  %v269_v7 = vlaneseq  ;;  %v601_v20 = vmov 0  }
  0x15   : > { %v267_v6 = vunpack.c.l.s4 %v600_v5  ;;  %517 = vset.pattern.permute.xlu1 %v601_v20  ;;  %518 = vset.pattern.permute.xlu0 %v601_v20 }
  0x16   : > { %s458_s27 = sshll.u32 %s680_s26, 3  ;;  %v270_v9 = vshrl.u32 %v269_v7, 7  ;;  %s451_s4 = sshll.u32 %s680_s26, 2 }
  0x17   : > { %s238_s30 = scalar_lea.vmem %s736_s0, %s458_s27  ;;  %v268_v8 = vunpack.c.0.s8 %v267_v6  ;;  %s245_s7 = scalar_lea.vmem %s737_s1, %s451_s4 }
  0x18   : > { %v253_v0 = vld [vmem:[%s238_s30] sm:$0xff]  ;;  %s252_s10 = scalar_lea.vmem %s738_s2, %s451_s4  ;;  %s522_s30 = scalar_lea.vmem %s335_s23, 128 }
  0x19   : > { %v255_v1 = vcombine.high %v253_v0, %v253_v0  ;;  %v258_v2 = vsel %vm257_vm0, %v253_v0, 0.0  ;;  %v271_v10 = vsub.s32 %v268_v8, %v270_v9  ;;  %v287_v24 = vld [vmem:[%s245_s7] sm:$0xf]  ;;  %p523_p12 = scmp.ne.s32.totalorder %s335_s23, %s522_s30  ;;  %s602_s4 = smov [#allocation2]  }
  0x1a   : > { %v302_v27 = vld [vmem:[%s252_s10] sm:$0xf]  ;;  %s526_s5 = sshll.u32 %s602_s4, 4  ;;  %s527_s5 = int_to_ptr.vmem [resolvable:$false] %s526_s5 }
  0x1b   : > { %v259_v3 = vsel %vm257_vm0, %v255_v1, 0.0  ;;  %p524_p13 = pnand %p523_p12, %p663_p4  ;;  %s528_s15 = scalar_lea.vmem %s527_s5, 256 }
  0x1c   : > { %v260_v4 = vadd.f32 %v259_v3, %v258_v2  ;;  %p529_p1 = scmp.lt.s32.totalorder %s335_s23, %s527_s5  ;;  %p530_p2 = scmp.lt.s32.totalorder %s528_s15, %s522_s30 }
  0x1d   : > { %p525_p0 = pneg %p524_p13 }
  0x1e   : > { %261 = vadd.xlane.f32.xlu0 %v260_v4  ;;  %p531_p3 = por %p530_p2, %p529_p1 }
  0x20   : > { %p532_p5 = pnand %p531_p3, %p525_p0 }
  0xa7   : > { %v262_v11 = vpop.xlane.xlu0 %261 }
  0xa8   : > { %v264_v12 = vmul.f32 0.00390625, %v262_v11 }
  0xaa   : > { %v272_v13 = vrot.slane %v264_v12, %v271_v10 }
  0xac   : > { %v274_v14 = vsub.f32 %v253_v0, %v272_v13 }
  0xae   : > { %v275_v15 = vmul.f32 %v274_v14, %v274_v14 }
  0xb0   : > { %v277_v16 = vcombine.high %v275_v15, %v275_v15  ;;  %v279_v17 = vsel %vm257_vm0, %v275_v15, 0.0 }
  0xb2   : > { %v280_v18 = vsel %vm257_vm0, %v277_v16, 0.0 }
  0xb3   : > { %v281_v19 = vadd.f32 %v280_v18, %v279_v17 }
  0xb5   : > { %282 = vadd.xlane.f32.xlu0 %v281_v19 }
 0x13e   : > { %v283_v21 = vpop.xlane.xlu0 %282 }
 0x13f   : > { %v284_v22 = vmul.f32 0.00390625, %v283_v21 }
 0x141   : > { %v285_v23 = vadd.f32 1e-05, %v284_v22 }
 0x143   : > { %520 = vrsqrt.f32 %v285_v23 }
 0x150   : > { %v521_v25 = vpop.eup %520 }
 0x151   : > { %v288_v26 = vmul.f32 %v521_v25, %v287_v24 }
 0x153   : > { %291 = vperm.xlu1 %517, %v288_v26  }
 0x157   : > { %305 = vperm.xlu1 %517, %v302_v27  }
 0x1ce   : > { %v292_v28 = vpop.permute.xlu1 %291 }
 0x1cf   : > { %v299_v29 = vrot.slane %v292_v28, %v271_v10 }
 0x1d1   : > { %v301_v31 = vmul.f32 %v299_v29, %v274_v14 }
 0x1d2   : > { %v306_v30 = vpop.permute.xlu1 %305 }
 0x1d3   : > { %v313_v32 = vrot.slane %v306_v30, %v271_v10 }
 0x1d5   : > { %v315_v33 = vadd.f32 %v313_v32, %v301_v31 }
 0x1d7   : > { %316 = vst [vmem:[%s229_s21] sm:$0xff] %v315_v33 }
 0x1d8   : > { %535 = shalt.err (!%p532_p5)
}
 0x1d9   : > { %s536_s6 = scalar_lea.hbm %s332_s28, 128  ;;  %s540_s9 = scalar_lea.hbm %s739_s3, 256 }
 0x1da   : > { %p537_p6 = scmp.ne.s32.totalorder %s332_s28, %s536_s6  ;;  %p541_p10 = scmp.lt.s32.totalorder %s332_s28, %s739_s3 }
 0x1db   : > { %p542_p11 = scmp.lt.s32.totalorder %s540_s9, %s536_s6 }
 0x1dc   : > { %p538_p7 = pnand %p537_p6, %p663_p4 }
 0x1dd   : > { %p543_p12 = por %p542_p11, %p541_p10 }
 0x1de   : > { %p539_p9 = pneg %p538_p7 }
 0x1e0   : > { %p544_p13 = pnand %p543_p12, %p539_p9 }
 0x1e2   : > { %547 = shalt.err (!%p544_p13)
}
 0x1e3   : > { %460 = dma.vmem_to_hbm [thread:$0]  (%p663_p4), %s335_s23, 128, %s332_s28, %s318_s29  }
 0x1e4 PF: > { %p466_p0 = scmp.ge.s32.totalorder %s598_s17, 2  ;;  %s346_s18 = sand.u32 1, %s578_s12  }
 0x1e5   : > { %s347_s19 = scalar_lea.sflag [#allocation3], %s346_s18 }
 0x1e6   : > { %p463_p1 = pnand %p466_p0, %p670_p8 }
 0x1e8   : > { %p464_p2 = pneg %p463_p1 }
 0x1ea   : > { %573 = dma.done.wait (%p464_p2), %s347_s19, 128  }
 0x1eb   : > { %575 = vsyncadd (%p464_p2), %s347_s19, 4294967168  ;;  %s16_s17 = sadd.s32 1, %s598_s17   ;;  %s742_s12 = smov %s582_s13 }
 0x1ec   : > { %p13_p3 = scmp.ge.s32.totalorder %s16_s17, 4   ;;  %s743_s13 = smov %s586_s14 }
 0x1ed   : > { %s744_s14 = smov %s676_s25  ;;  %s745_s15 = smov %s594_s16 }
 0x1ee   : > { %s746_s16 = smov %s748_s20  ;;  %15 = sbr.rel (!%p13_p3) target bundleno = 4 (0x4), region = 73 }
 0x1f3   :  { %352 = vsyncpa [#allocation3], 1 }
 0x1f4   :  { %354 = vsyncpa [#allocation3 + $0x1], 1 }

</bundles_post_ra>
